<compile_context>
chip_gen: v7x
topology: tpu7x:2x2x1
jax: 0.10.0
libtpu: 0.0.40
codegen_flags: <defaults>
</compile_context>

<pallas_src>
import functools

import jax
import jax.numpy as jnp
from jax.experimental import pallas as pl
from jax.experimental.pallas import tpu as pltpu


def _probe_points_kernel(ax_ref, vx_ref, pos_ref, wmix_ref, wvecbd_ref, out_ref,
                         *, heads, n_base):
    """One grid step = one tile of TN flattened (batch*node) columns.

    ax_ref    : (A,  TN)   activation features, node-minor
    vx_ref    : (3V, TN)   translation-invariant vectors, rows = (component, vdim)
    pos_ref   : (3P, TN)   stacked base points,          rows = (component, base_pt)
    wmix_ref  : (H*P, A)   W_mix flattened over (head, base_pt)     (resident)
    wvecbd_ref: (3H, 3V)   block-diagonal copy of W_vec per component (resident)
    out_ref   : (3H, TN)   rows = (component, head)
    """
    tn = out_ref.shape[-1]

    # Mixture logits for ALL heads / base points with one MXU matmul.
    logits = jnp.dot(wmix_ref[...], ax_ref[...],
                     preferred_element_type=jnp.float32)          # (H*P, TN)
    logits = logits.reshape(heads, n_base, tn)                    # (H, P, TN)

    # Softmax over base points, normalization deferred.
    m = jnp.max(logits, axis=1, keepdims=True)                    # (H, 1, TN)
    e = jnp.exp(logits - m)                                       # (H, P, TN)  (EUP)
    inv = 1.0 / jnp.sum(e, axis=1)                                # (H, TN) exact divide

    # All three spatial delta components in one MXU matmul.
    delta = jnp.dot(wvecbd_ref[...], vx_ref[...],
                    preferred_element_type=jnp.float32)           # (3H, TN)

    # Per-component probe points (VPU mul + sublane reduce), lane-dense stores.
    for c in range(3):                                            # static tiny unroll
        pos_c = pos_ref[c * n_base:(c + 1) * n_base, :].astype(jnp.float32)   # (P, TN)
        probe_c = jnp.sum(e * pos_c[None, :, :], axis=1) * inv                # (H, TN)
        out_ref[c * heads:(c + 1) * heads, :] = (
            probe_c + delta[c * heads:(c + 1) * heads, :]).astype(out_ref.dtype)


def probe_points2(ax, vx, positions_list, w_mix, w_vec, *, block_n=2048):
    """Pallas implementation of ProbePoints2.forward.

    ax: (B, N, adim), vx: (B, N, vdim, 3), positions_list: list of P arrays (B, N, 3)
    returns: (B, heads, N, 3)

    block_n: tile size along the flattened batch*node axis (rounded to a multiple
    of 128). 1024-4096 is the sweet spot on all generations (double-buffered VMEM
    is only a few MB even at 4096); pick the largest value that still leaves >=2
    grid steps.  On v5e, if DMA is still exposed, deepen buffering
    (pipeline_mode=pl.Buffered(3) on the streamed in_specs) rather than shrinking.
    """
    B, N, A = ax.shape
    _, _, V, _ = vx.shape
    H, P, _ = w_mix.shape

    # ---- wrapper-side layout plumbing: flatten (B, N) and make it lane-minor ----
    positions = jnp.stack(positions_list, axis=2)                  # (B, N, P, 3)
    BN = B * N
    ax_f = jnp.transpose(ax, (2, 0, 1)).reshape(A, BN)             # (A,  BN)
    vx_f = jnp.transpose(vx, (3, 2, 0, 1)).reshape(3 * V, BN)      # (3V, BN)
    pos_f = jnp.transpose(positions, (3, 2, 0, 1)).reshape(3 * P, BN)  # (3P, BN)

    wmix_flat = w_mix.reshape(H * P, A)                            # (H*P, A)
    # Block-diagonal W_vec: delta for all 3 components in one matmul.
    wvec_bd = jnp.kron(jnp.eye(3, dtype=w_vec.dtype), w_vec)       # (3H, 3V)

    # Tile the flattened node axis; pad with zeros (softmax of zero logits is
    # finite and padded columns are sliced away).
    tn = 128 * pl.cdiv(min(BN, block_n), 128)
    bn_pad = tn * pl.cdiv(BN, tn)
    pad = bn_pad - BN
    if pad:
        ax_f = jnp.pad(ax_f, ((0, 0), (0, pad)))
        vx_f = jnp.pad(vx_f, ((0, 0), (0, pad)))
        pos_f = jnp.pad(pos_f, ((0, 0), (0, pad)))

    kernel = functools.partial(_probe_points_kernel, heads=H, n_base=P)
    out_f = pl.pallas_call(
        kernel,
        out_shape=jax.ShapeDtypeStruct((3 * H, bn_pad), ax.dtype),
        grid_spec=pltpu.PrefetchScalarGridSpec(
            num_scalar_prefetch=0,
            grid=(bn_pad // tn,),
            in_specs=[
                pl.BlockSpec((A, tn), lambda i: (0, i)),
                pl.BlockSpec((3 * V, tn), lambda i: (0, i)),
                pl.BlockSpec((3 * P, tn), lambda i: (0, i)),
                pl.BlockSpec((H * P, A), lambda i: (0, 0)),      # weights resident
                pl.BlockSpec((3 * H, 3 * V), lambda i: (0, 0)),  # weights resident
            ],
            out_specs=pl.BlockSpec((3 * H, tn), lambda i: (0, i)),
        ),
        compiler_params=pltpu.CompilerParams(
            dimension_semantics=("parallel",)),
    )(ax_f, vx_f, pos_f, wmix_flat, wvec_bd)

    # (3H, BN_pad) -> (B, H, N, 3)
    out = out_f[:, :BN].reshape(3, H, B, N)
    return jnp.transpose(out, (2, 1, 3, 0))


def probe_points2_ref(ax, vx, positions_list, w_mix, w_vec):
    """Pure-JAX reference mirroring the PyTorch einsums, kept at f32 precision
    (HIGHEST-precision matmul + explicit mul/reduce) so the comparison is not
    dominated by MXU default-precision (bf16) truncation."""
    positions = jnp.stack(positions_list, axis=2)                        # (B, N, P, 3)
    logits = jnp.einsum('hpj,bnj->bhnp', w_mix, ax,
                        precision=jax.lax.Precision.HIGHEST)             # (B, H, N, P)
    mixture = jax.nn.softmax(logits, axis=3)
    probe = jnp.sum(positions[:, None] * mixture[..., None], axis=3)     # (B, H, N, 3)
    delta = jnp.sum(w_vec[None, :, None, :, None] * vx[:, None], axis=3) # (B, H, N, 3)
    return probe + delta


if __name__ == "__main__":
    # Small shapes consistent with the module's forward signature.
    B, N, A, V, H, P = 2, 16, 32, 16, 4, 8   # batch, nodes, adim, vdim, heads, n_base_pts

    key = jax.random.PRNGKey(0)
    k1, k2, k3, k4, k5 = jax.random.split(key, 5)

    def bf16_exact(x):
        # bf16-representable f32 values: any bf16 truncation inside either the
        # kernel's MXU matmuls or the reference is then lossless, so the check
        # compares algorithms rather than MXU default-precision rounding.
        return x.astype(jnp.bfloat16).astype(jnp.float32)

    ax = bf16_exact(jax.random.normal(k1, (B, N, A), dtype=jnp.float32))
    vx = bf16_exact(jax.random.normal(k2, (B, N, V, 3), dtype=jnp.float32))
    positions_list = [
        bf16_exact(jax.random.normal(jax.random.fold_in(k3, i), (B, N, 3),
                                     dtype=jnp.float32))
        for i in range(P)
    ]

    # self_init(): W_mix ~ N(0, adim^-0.5), W_vec ~ N(0, vdim^-0.5)
    w_mix = bf16_exact(jax.random.normal(k4, (H, P, A), dtype=jnp.float32) * (A ** -0.5))
    w_vec = bf16_exact(jax.random.normal(k5, (H, V), dtype=jnp.float32) * (V ** -0.5))

    out = probe_points2(ax, vx, positions_list, w_mix, w_vec)
    out = jax.block_until_ready(out)

    ref = probe_points2_ref(ax, vx, positions_list, w_mix, w_vec)
    assert out.shape == (B, H, N, 3), out.shape
    max_err = jnp.max(jnp.abs(out - ref))
    assert jnp.allclose(out, ref, rtol=2e-3, atol=2e-3), \
        f"kernel mismatch vs reference (max abs err = {max_err})"

    print("KERNEL_OK")
</pallas_src>

<mosaic_0001>
module attributes {stable_mosaic.version = 11 : i64} {
  func.func @_probe_points_kernel(%arg0: i32, %arg1: memref<32x128xf32, #tpu.memory_space<vmem>>, %arg2: memref<48x128xf32, #tpu.memory_space<vmem>>, %arg3: memref<24x128xf32, #tpu.memory_space<vmem>>, %arg4: memref<32x32xf32, #tpu.memory_space<vmem>>, %arg5: memref<12x48xf32, #tpu.memory_space<vmem>>, %arg6: memref<12x128xf32, #tpu.memory_space<vmem>>) attributes {dimension_semantics = [#tpu.dimension_semantics<parallel>], iteration_bounds = array<i64: 1>, scalar_prefetch = 0 : i64, scratch_operands = 0 : i64, tpu.core_type = #tpu.core_type<tc>, window_params = [{transform_indices = @transform_0, window_bounds = array<i64: 32, 128>}, {transform_indices = @transform_1, window_bounds = array<i64: 48, 128>}, {transform_indices = @transform_2, window_bounds = array<i64: 24, 128>}, {pipeline_mode = #tpu.pipeline_mode<synchronous>, transform_indices = @transform_3, window_bounds = array<i64: 32, 32>}, {pipeline_mode = #tpu.pipeline_mode<synchronous>, transform_indices = @transform_4, window_bounds = array<i64: 12, 48>}, {transform_indices = @transform_5, window_bounds = array<i64: 12, 128>}]} {
    %c0 = arith.constant 0 : index
    %c0_0 = arith.constant 0 : index
    %0 = vector.load %arg4[%c0, %c0_0] : memref<32x32xf32, #tpu.memory_space<vmem>>, vector<32x32xf32>
    %c0_1 = arith.constant 0 : index
    %c0_2 = arith.constant 0 : index
    %1 = vector.load %arg1[%c0_1, %c0_2] : memref<32x128xf32, #tpu.memory_space<vmem>>, vector<32x128xf32>
    %cst = arith.constant dense<0.000000e+00> : vector<32x128xf32>
    %2 = tpu.matmul %0, %1, %cst {dimension_numbers = #tpu.dot_dimension_numbers<[1], [0], [0], [1], [0, 0, 1, 1], [], []>} : vector<32x32xf32>, vector<32x128xf32>, vector<32x128xf32> -> vector<32x128xf32>
    %3 = vector.shape_cast %2 : vector<32x128xf32> to vector<4x8x128xf32>
    %cst_3 = arith.constant dense<0xFF800000> : vector<4x128xf32>
    %4 = vector.multi_reduction <maximumf>, %3, %cst_3 [1] : vector<4x8x128xf32> to vector<4x128xf32>
    %5 = vector.shape_cast %4 : vector<4x128xf32> to vector<4x1x128xf32>
    %6 = vector.broadcast %5 : vector<4x1x128xf32> to vector<4x8x128xf32>
    %7 = arith.subf %3, %6 : vector<4x8x128xf32>
    %8 = math.exp %7 : vector<4x8x128xf32>
    %cst_4 = arith.constant dense<0.000000e+00> : vector<4x128xf32>
    %9 = vector.multi_reduction <add>, %8, %cst_4 [1] : vector<4x8x128xf32> to vector<4x128xf32>
    %cst_5 = arith.constant 1.000000e+00 : f32
    %10 = vector.broadcast %cst_5 : f32 to vector<4x128xf32>
    %11 = arith.divf %10, %9 : vector<4x128xf32>
    %c0_6 = arith.constant 0 : index
    %c0_7 = arith.constant 0 : index
    %12 = vector.load %arg5[%c0_6, %c0_7] : memref<12x48xf32, #tpu.memory_space<vmem>>, vector<12x48xf32>
    %c0_8 = arith.constant 0 : index
    %c0_9 = arith.constant 0 : index
    %13 = vector.load %arg2[%c0_8, %c0_9] : memref<48x128xf32, #tpu.memory_space<vmem>>, vector<48x128xf32>
    %cst_10 = arith.constant dense<0.000000e+00> : vector<12x128xf32>
    %14 = tpu.matmul %12, %13, %cst_10 {dimension_numbers = #tpu.dot_dimension_numbers<[1], [0], [0], [1], [0, 0, 1, 1], [], []>} : vector<12x48xf32>, vector<48x128xf32>, vector<12x128xf32> -> vector<12x128xf32>
    %c0_11 = arith.constant 0 : index
    %c0_12 = arith.constant 0 : index
    %15 = vector.load %arg3[%c0_11, %c0_12] : memref<24x128xf32, #tpu.memory_space<vmem>>, vector<8x128xf32>
    %16 = vector.shape_cast %15 : vector<8x128xf32> to vector<1x8x128xf32>
    %17 = vector.broadcast %16 : vector<1x8x128xf32> to vector<4x8x128xf32>
    %18 = arith.mulf %8, %17 : vector<4x8x128xf32>
    %cst_13 = arith.constant dense<0.000000e+00> : vector<4x128xf32>
    %19 = vector.multi_reduction <add>, %18, %cst_13 [1] : vector<4x8x128xf32> to vector<4x128xf32>
    %20 = arith.mulf %19, %11 : vector<4x128xf32>
    %21 = vector.extract_strided_slice %14 {offsets = [0, 0], sizes = [4, 128], strides = [1, 1]} : vector<12x128xf32> to vector<4x128xf32>
    %22 = arith.addf %20, %21 : vector<4x128xf32>
    %c0_14 = arith.constant 0 : index
    %c0_15 = arith.constant 0 : index
    %23 = vector.load %arg6[%c0_14, %c0_15] : memref<12x128xf32, #tpu.memory_space<vmem>>, vector<4x128xf32>
    tpu.vector_store %arg6[%c0_14, %c0_15], %22 {strides = array<i32>} : memref<12x128xf32, #tpu.memory_space<vmem>>, vector<4x128xf32>,
    %c8 = arith.constant 8 : index
    %c0_16 = arith.constant 0 : index
    %24 = vector.load %arg3[%c8, %c0_16] : memref<24x128xf32, #tpu.memory_space<vmem>>, vector<8x128xf32>
    %25 = vector.shape_cast %24 : vector<8x128xf32> to vector<1x8x128xf32>
    %26 = vector.broadcast %25 : vector<1x8x128xf32> to vector<4x8x128xf32>
    %27 = arith.mulf %8, %26 : vector<4x8x128xf32>
    %cst_17 = arith.constant dense<0.000000e+00> : vector<4x128xf32>
    %28 = vector.multi_reduction <add>, %27, %cst_17 [1] : vector<4x8x128xf32> to vector<4x128xf32>
    %29 = arith.mulf %28, %11 : vector<4x128xf32>
    %30 = vector.extract_strided_slice %14 {offsets = [4, 0], sizes = [4, 128], strides = [1, 1]} : vector<12x128xf32> to vector<4x128xf32>
    %31 = arith.addf %29, %30 : vector<4x128xf32>
    %c4 = arith.constant 4 : index
    %c0_18 = arith.constant 0 : index
    %32 = vector.load %arg6[%c4, %c0_18] : memref<12x128xf32, #tpu.memory_space<vmem>>, vector<4x128xf32>
    tpu.vector_store %arg6[%c4, %c0_18], %31 {strides = array<i32>} : memref<12x128xf32, #tpu.memory_space<vmem>>, vector<4x128xf32>,
    %c16 = arith.constant 16 : index
    %c0_19 = arith.constant 0 : index
    %33 = vector.load %arg3[%c16, %c0_19] : memref<24x128xf32, #tpu.memory_space<vmem>>, vector<8x128xf32>
    %34 = vector.shape_cast %33 : vector<8x128xf32> to vector<1x8x128xf32>
    %35 = vector.broadcast %34 : vector<1x8x128xf32> to vector<4x8x128xf32>
    %36 = arith.mulf %8, %35 : vector<4x8x128xf32>
    %cst_20 = arith.constant dense<0.000000e+00> : vector<4x128xf32>
    %37 = vector.multi_reduction <add>, %36, %cst_20 [1] : vector<4x8x128xf32> to vector<4x128xf32>
    %38 = arith.mulf %37, %11 : vector<4x128xf32>
    %39 = vector.extract_strided_slice %14 {offsets = [8, 0], sizes = [4, 128], strides = [1, 1]} : vector<12x128xf32> to vector<4x128xf32>
    %40 = arith.addf %38, %39 : vector<4x128xf32>
    %c8_21 = arith.constant 8 : index
    %c0_22 = arith.constant 0 : index
    %41 = vector.load %arg6[%c8_21, %c0_22] : memref<12x128xf32, #tpu.memory_space<vmem>>, vector<4x128xf32>
    tpu.vector_store %arg6[%c8_21, %c0_22], %40 {strides = array<i32>} : memref<12x128xf32, #tpu.memory_space<vmem>>, vector<4x128xf32>,
    return
  }
  func.func @transform_0(%arg0: i32) -> (i32, i32) {
    %c0_i32 = arith.constant 0 : i32
    %c0_i32_0 = arith.constant 0 : i32
    return %c0_i32, %arg0 : i32, i32
  }
  func.func @transform_1(%arg0: i32) -> (i32, i32) {
    %c0_i32 = arith.constant 0 : i32
    %c0_i32_0 = arith.constant 0 : i32
    return %c0_i32, %arg0 : i32, i32
  }
  func.func @transform_2(%arg0: i32) -> (i32, i32) {
    %c0_i32 = arith.constant 0 : i32
    %c0_i32_0 = arith.constant 0 : i32
    return %c0_i32, %arg0 : i32, i32
  }
  func.func @transform_3(%arg0: i32) -> (i32, i32) {
    %c0_i32 = arith.constant 0 : i32
    %c0_i32_0 = arith.constant 0 : i32
    %c0_i32_1 = arith.constant 0 : i32
    return %c0_i32, %c0_i32_0 : i32, i32
  }
  func.func @transform_4(%arg0: i32) -> (i32, i32) {
    %c0_i32 = arith.constant 0 : i32
    %c0_i32_0 = arith.constant 0 : i32
    %c0_i32_1 = arith.constant 0 : i32
    return %c0_i32, %c0_i32_0 : i32, i32
  }
  func.func @transform_5(%arg0: i32) -> (i32, i32) {
    %c0_i32 = arith.constant 0 : i32
    %c0_i32_0 = arith.constant 0 : i32
    return %c0_i32, %arg0 : i32, i32
  }
}

</mosaic_0001>

<bundles_post_ra>
// kernel: tpu_custom_call.1
= control target key start
LH: loop header
LB: loop body
LE: loop exit
PB: predicated region body
PF: predicated region fallthrough
CT: control target
= control target key end

     0   :  { %10 = vsyncpa [#allocation3], 0  ;;  %s1003_s0 = inlined_call_operand.hbm [shape: f32[32,128], index: 0, kind: input, shape index: {}]   ;;  %s1004_s1 = inlined_call_operand.hbm [shape: f32[48,128], index: 1, kind: input, shape index: {}]   ;;  %s1005_s2 = inlined_call_operand.hbm [shape: f32[24,128], index: 2, kind: input, shape index: {}]   ;;  %s1006_s3 = inlined_call_operand.hbm [shape: f32[32,32], index: 3, kind: input, shape index: {}]   ;;  %s1007_s4 = inlined_call_operand.hbm [shape: f32[12,48], index: 4, kind: input, shape index: {}]   ;;  %s1008_s5 = inlined_call_operand.hbm [shape: f32[12,128], index: 5, kind: output, shape index: {}]  }
   0x1   :  { %11 = vsyncpa [#allocation6], 0 }
   0x2   :  { %12 = vsyncpa [#allocation9], 0 }
   0x3   :  { %13 = vsyncpa [#allocation4], 0  ;;  %s781_s18 = smov [#allocation5]   ;;  %s782_s20 = smov [#allocation8]  }
   0x4   :  { %s31_s19 = sshll.u32 %s781_s18, 4  ;;  %s55_s21 = sshll.u32 %s782_s20, 4  ;;  %s32_s19 = int_to_ptr.vmem [resolvable:$true] %s31_s19  ;;  %s819_s21 = int_to_ptr.vmem [resolvable:$true] %s55_s21 }
   0x5   :  { %s641_s24 = scalar_lea.hbm %s1004_s1, 768 }
   0x6   :  { %p642_p0 = scmp.ne.s32.totalorder %s1004_s1, %s641_s24  ;;  %p645_p1 = scmp.lt.u32.totalorder %s641_s24, %s1004_s1 }
   0x8   :  { %p647_p2 = pnand %p645_p1, %p642_p0 }
   0xa   :  { %650 = shalt.err (!%p647_p2)
}
   0xb   :  { %s651_s29 = scalar_lea.vmem %s32_s19, 768  ;;  %p656_p4 = scmp.lt.s32.totalorder %s32_s19, %s32_s19 }
   0xc   :  { %p652_p3 = scmp.ne.s32.totalorder %s32_s19, %s651_s29  ;;  %p657_p5 = scmp.lt.s32.totalorder %s651_s29, %s651_s29 }
   0xe   :  { %p658_p6 = por %p657_p5, %p656_p4 }
  0x10   :  { %p659_p7 = pnand %p658_p6, %p652_p3 }
  0x12   :  { %662 = shalt.err (!%p659_p7)
}
  0x13   :  { %s783_s30 = smov 128   ;;  %s784_s6 = smov 8  }
  0x14   :  { %37 = dma.hbm_to_vmem [thread:$0]  %s1004_s1, 768, %s32_s19, [#allocation6], %s783_s30, %s783_s30, %s784_s6  }
  0x15   :  { %s663_s11 = scalar_lea.hbm %s1006_s3, 512 }
  0x16   :  { %p664_p8 = scmp.ne.s32.totalorder %s1006_s3, %s663_s11  ;;  %p667_p9 = scmp.lt.u32.totalorder %s663_s11, %s1006_s3 }
  0x18   :  { %p669_p10 = pnand %p667_p9, %p664_p8 }
  0x1a   :  { %672 = shalt.err (!%p669_p10)
}
  0x1b   :  { %s673_s16 = scalar_lea.vmem %s819_s21, 512  ;;  %p678_p12 = scmp.lt.s32.totalorder %s819_s21, %s819_s21 }
  0x1c   :  { %p674_p11 = scmp.ne.s32.totalorder %s819_s21, %s673_s16  ;;  %p679_p13 = scmp.lt.s32.totalorder %s673_s16, %s673_s16 }
  0x1e   :  { %p680_p0 = por %p679_p13, %p678_p12 }
  0x20   :  { %p681_p1 = pnand %p680_p0, %p674_p11 }
  0x22   :  { %684 = shalt.err (!%p681_p1)
}
  0x23   :  { %61 = dma.hbm_to_vmem [thread:$0]  %s1006_s3, 512, %s819_s21, [#allocation9], %s783_s30, %s783_s30, %s784_s6  }
  0x24   :  { %s785_s18 = smov [#allocation2]   ;;  %s786_s20 = smov [#allocation7]  }
  0x25   :  { %s19_s19 = sshll.u32 %s785_s18, 4  ;;  %s43_s22 = sshll.u32 %s786_s20, 4  ;;  %s20_s19 = int_to_ptr.vmem [resolvable:$true] %s19_s19  ;;  %s856_s22 = int_to_ptr.vmem [resolvable:$true] %s43_s22 }
  0x26   :  { %s685_s25 = scalar_lea.hbm %s1003_s0, 512 }
  0x27   :  { %p686_p2 = scmp.ne.s32.totalorder %s1003_s0, %s685_s25  ;;  %p689_p3 = scmp.lt.u32.totalorder %s685_s25, %s1003_s0 }
  0x29   :  { %p691_p4 = pnand %p689_p3, %p686_p2 }
  0x2b   :  { %694 = shalt.err (!%p691_p4)
}
  0x2c   :  { %s695_s3 = scalar_lea.vmem %s20_s19, 512  ;;  %p700_p6 = scmp.lt.s32.totalorder %s20_s19, %s20_s19 }
  0x2d   :  { %p696_p5 = scmp.ne.s32.totalorder %s20_s19, %s695_s3  ;;  %p701_p7 = scmp.lt.s32.totalorder %s695_s3, %s695_s3 }
  0x2f   :  { %p702_p8 = por %p701_p7, %p700_p6 }
  0x31   :  { %p703_p9 = pnand %p702_p8, %p696_p5 }
  0x33   :  { %706 = shalt.err (!%p703_p9)
}
  0x34   :  { %25 = dma.hbm_to_vmem [thread:$0]  %s1003_s0, 512, %s20_s19, [#allocation3], %s783_s30, %s783_s30, %s784_s6  }
  0x35   :  { %s707_s10 = scalar_lea.hbm %s1005_s2, 384 }
  0x36   :  { %p708_p10 = scmp.ne.s32.totalorder %s1005_s2, %s707_s10  ;;  %p711_p11 = scmp.lt.u32.totalorder %s707_s10, %s1005_s2 }
  0x38   :  { %p713_p12 = pnand %p711_p11, %p708_p10 }
  0x3a   :  { %716 = shalt.err (!%p713_p12)
}
  0x3b   :  { %s717_s15 = scalar_lea.vmem %s856_s22, 384  ;;  %p722_p0 = scmp.lt.s32.totalorder %s856_s22, %s856_s22 }
  0x3c   :  { %p718_p13 = scmp.ne.s32.totalorder %s856_s22, %s717_s15  ;;  %p723_p1 = scmp.lt.s32.totalorder %s717_s15, %s717_s15 }
  0x3e   :  { %p724_p2 = por %p723_p1, %p722_p0 }
  0x40   :  { %p725_p3 = pnand %p724_p2, %p718_p13 }
  0x42   :  { %728 = shalt.err (!%p725_p3)
}
  0x43   :  { %49 = dma.hbm_to_vmem [thread:$0]  %s1005_s2, 384, %s856_s22, [#allocation6], %s783_s30, %s783_s30, %s784_s6  }
  0x44   :  { %s787_s1 = smov [#allocation10]   ;;  %s729_s20 = scalar_lea.hbm %s1007_s4, 256 }
  0x45   :  { %s67_s17 = sshll.u32 %s787_s1, 4  ;;  %p730_p4 = scmp.ne.s32.totalorder %s1007_s4, %s729_s20  ;;  %s68_s17 = int_to_ptr.vmem [resolvable:$true] %s67_s17 }
  0x46   :  { %p733_p5 = scmp.lt.u32.totalorder %s729_s20, %s1007_s4 }
  0x48   :  { %p735_p6 = pnand %p733_p5, %p730_p4 }
  0x4a   :  { %738 = shalt.err (!%p735_p6)
}
  0x4b   :  { %s739_s27 = scalar_lea.vmem %s68_s17, 256  ;;  %p744_p8 = scmp.lt.s32.totalorder %s68_s17, %s68_s17 }
  0x4c   :  { %p740_p7 = scmp.ne.s32.totalorder %s68_s17, %s739_s27  ;;  %p745_p9 = scmp.lt.s32.totalorder %s739_s27, %s739_s27 }
  0x4e   :  { %p746_p10 = por %p745_p9, %p744_p8 }
  0x50   :  { %p747_p11 = pnand %p746_p10, %p740_p7 }
  0x52   :  { %750 = shalt.err (!%p747_p11)
}
  0x53   :  { %73 = dma.hbm_to_vmem [thread:$0]  %s1007_s4, 256, %s68_s17, [#allocation9], %s783_s30, %s783_s30, %s784_s6  }
  0x54   :  { %773 = dma.done.wait [#allocation3], 512  }
  0x55   :  { %774 = vsyncadd [#allocation3], 4294966784 }
  0x56   :  { %775 = dma.done.wait [#allocation6], 1152  }
  0x57   :  { %776 = vsyncadd [#allocation6], 4294966144 }
  0x58   :  { %777 = dma.done.wait [#allocation9], 768  }
  0x59   :  { %778 = vsyncadd [#allocation9], 4294966528  ;;  %vm97_vm0 = vcmask 261120   ;;  %v93_v0 = vld [vmem:[#allocation2] sm:$0xff]  ;;  %v94_v1 = vld [vmem:[#allocation2 + $0x8] sm:$0xff]  ;;  %vm271_vm1 = vcmask 392192  }
  0x5a   :  { %v95_v2 = vld [vmem:[#allocation2 + $0x10] sm:$0xff]  ;;  %v597_v3 = vpack.c.bf16 %v94_v1, %v93_v0  ;;  %v96_v4 = vld [vmem:[#allocation2 + $0x18] sm:$0xff]  ;;  %v89_v5 = vld [vmem:[#allocation8] sm:$0xff]  ;;  %vm403_vm2 = vcmask 1041409   ;;  %vm406_vm3 = vcmask 1042434   ;;  %vm409_vm4 = vcmask 1043459  }
  0x5b   :  { %v601_v6 = vpack.c.bf16 %v96_v4, %v95_v2  ;;  %576 = vmatprep.mubr.msk.f32.mxu0 %vm97_vm0, %v89_v5  ;;  %v265_v7 = vld [vmem:[#allocation5] sm:$0xff]  ;;  %v266_v8 = vld [vmem:[#allocation5 + $0x8] sm:$0xff]  ;;  %v267_v9 = vld [vmem:[#allocation5 + $0x10] sm:$0xff]  ;;  %s788_s4 = smov [#allocation11]  }
  0x5c   :  { %598 = vmatprep.subr.bf16.mxu0 %v597_v3  ;;  %v268_v10 = vld [vmem:[#allocation5 + $0x18] sm:$0xff]  ;;  %v605_v11 = vpack.c.bf16 %v266_v8, %v265_v7  ;;  %v263_v13 = vld [vmem:[#allocation10] sm:$0xff]  ;;  %v269_v14 = vld [vmem:[#allocation5 + $0x20] sm:$0xff]  ;;  %s532_s28 = sshll.u32 %s788_s4, 4  ;;  %s533_s28 = int_to_ptr.vmem [resolvable:$true] %s532_s28 }
  0x5d   :  { %600 = vmatpush3.bf16.msra.mxu0 %v597_v3  ;;  %v609_v12 = vpack.c.bf16 %v268_v10, %v267_v9  ;;  %v270_v15 = vld [vmem:[#allocation5 + $0x28] sm:$0xff]  ;;  %594 = vmatprep.mubr.msk.f32.mxu1 %vm271_vm1, %v263_v13  ;;  %v90_v16 = vld [vmem:[#allocation8 + $0x8] sm:$0xff]  ;;  %v91_v18 = vld [vmem:[#allocation8 + $0x10] sm:$0xff]  ;;  %s751_s29 = scalar_lea.vmem %s533_s28, 256  ;;  %p756_p13 = scmp.lt.s32.totalorder %s533_s28, %s533_s28 }
  0x5e   :  { %602 = vmatprep.subr.bf16.mxu0 %v601_v6  ;;  %606 = vmatprep.subr.bf16.mxu1 %v605_v11  ;;  %v613_v17 = vpack.c.bf16 %v270_v15, %v269_v14  ;;  %v92_v19 = vld [vmem:[#allocation8 + $0x18] sm:$0xff]  ;;  %v264_v20 = vld [vmem:[#allocation10 + $0x8] sm:$0xf]  ;;  %v920_v61 = vld [vmem:[#allocation7 + $0x8] sm:$0xff]  ;;  %p752_p12 = scmp.ne.s32.totalorder %s533_s28, %s751_s29  ;;  %p757_p0 = scmp.lt.s32.totalorder %s751_s29, %s751_s29 }
  0x5f   :  { %608 = vmatpush3.bf16.msra.mxu1 %v605_v11  ;;  %v470_v59 = vld [vmem:[#allocation7 + $0x10] sm:$0xff]  ;;  %v918_v60 = vld [vmem:[#allocation7] sm:$0xff] }
  0x60   :  { %610 = vmatprep.subr.bf16.mxu1 %v609_v12  ;;  %p758_p1 = por %p757_p0, %p756_p13 }
  0x61   :  { %604 = vmatpush3.bf16.msra.mxu0 %v601_v6 }
  0x62   :  { %p759_p2 = pnand %p758_p1, %p752_p12 }
  0x63   :  { %612 = vmatpush3.bf16.msra.mxu1 %v609_v12 }
  0x64   :  { %577 = vmatmul.mubr.msk.f32.vlgmr.msra.gmra.mrb[0].mxu0 %vm97_vm0, %v90_v16  ;;  %614 = vmatprep.subr.bf16.mxu1 %v613_v17 }
  0x65   :  { %579 = vmatprep.mubr.msk.f32.mxu0 %vm97_vm0, %v91_v18 }
  0x67   :  { %616 = vmatpush3.bf16.msra.mxu1 %v613_v17 }
  0x68   :  { %580 = vmatmul.mubr.msk.f32.gmra.mrb[2].mxu0 %vm97_vm0, %v92_v19 }
  0x6a   :  { %595 = vmatmul.mubr.msk.f32.vlgmr.msra.gmra.mrb[0].mxu1 %vm271_vm1, %v264_v20 }
 0x137   :  { %v578_v21 = vpop.f32.mrb[0].mxu0 }
 0x138   :  { %v201_v22 = vrot.slane %v578_v21, 4  ;;  %v176_v23 = vpop.f32.mrb[1].mxu0 }
 0x139   :  { %v195_v24 = vrot.slane %v176_v23, 4 }
 0x13a   :  { %v202_v25 = vmax.f32 %v578_v21, %v201_v22 }
 0x13b   :  { %v196_v26 = vmax.f32 %v176_v23, %v195_v24  ;;  %v581_v27 = vpop.f32.mrb[2].mxu0 }
 0x13c   :  { %v203_v28 = vrot.slane %v202_v25, 2  ;;  %v213_v29 = vrot.slane %v581_v27, 4  ;;  %v186_v30 = vpop.f32.mrb[3].mxu0 }
 0x13d   :  { %v197_v31 = vrot.slane %v196_v26, 2  ;;  %v207_v32 = vrot.slane %v186_v30, 4  ;;  %v914_v35 = vpop.f32.mrb[0].mxu1 }
 0x13e   :  { %v204_v33 = vmax.f32 %v202_v25, %v203_v28  ;;  %v214_v34 = vmax.f32 %v581_v27, %v213_v29  ;;  %v916_v38 = vpop.f32.mrb[1].mxu1  ;;  %v504_v62 = vrot.slane %v914_v35, 1  ;;  %v505_v63 = vrot.slane %v914_v35, 2 }
 0x13f   :  { %v198_v36 = vmax.f32 %v196_v26, %v197_v31  ;;  %v208_v37 = vmax.f32 %v186_v30, %v207_v32  ;;  %v506_v0 = vrot.slane %v914_v35, 3  ;;  %v387_v2 = vrot.slane %v916_v38, 1 }
 0x140   :  { %v205_v39 = vrot.slane %v204_v33, 1  ;;  %v215_v40 = vrot.slane %v214_v34, 2  ;;  %v388_v3 = vrot.slane %v916_v38, 2  ;;  %v446_v4 = vrot.slane %v916_v38, 4 }
 0x141   :  { %v199_v41 = vrot.slane %v198_v36, 1  ;;  %v209_v42 = vrot.slane %v208_v37, 2  ;;  %v389_v5 = vrot.slane %v916_v38, 3 }
 0x142   :  { %v206_v43 = vmax.f32 %v204_v33, %v205_v39  ;;  %v216_v44 = vmax.f32 %v214_v34, %v215_v40 }
 0x143   :  { %v200_v45 = vmax.f32 %v198_v36, %v199_v41  ;;  %v210_v46 = vmax.f32 %v208_v37, %v209_v42 }
 0x144   :  { %v220_v47 = vsub.f32 %v578_v21, %v206_v43  ;;  %v217_v48 = vrot.slane %v216_v44, 1 }
 0x145   :  { %v219_v49 = vsub.f32 %v176_v23, %v200_v45  ;;  %v211_v50 = vrot.slane %v210_v46, 1 }
 0x146   :  { %v225_v51 = vmul.f32 1.442695, %v220_v47  ;;  %v218_v52 = vmax.f32 %v216_v44, %v217_v48 }
 0x147   :  { %v223_v53 = vmul.f32 1.442695, %v219_v49  ;;  %v212_v54 = vmax.f32 %v210_v46, %v211_v50 }
 0x148   :  { %625 = vpow2.f32 %v225_v51  ;;  %v222_v55 = vsub.f32 %v581_v27, %v218_v52 }
 0x149   :  { %627 = vpow2.f32 %v223_v53  ;;  %v221_v56 = vsub.f32 %v186_v30, %v212_v54 }
 0x14a   :  { %v229_v57 = vmul.f32 1.442695, %v222_v55 }
 0x14b   :  { %v227_v58 = vmul.f32 1.442695, %v221_v56 }
 0x14c   :  { %629 = vpow2.f32 %v229_v57 }
 0x14d   :  { %631 = vpow2.f32 %v227_v58 }
 0x152   :  { %v626_v1 = vpop.eup %625 }
 0x153   :  { %v628_v6 = vpop.eup %627  ;;  %v237_v7 = vrot.slane %v626_v1, 4  ;;  %v472_v8 = vmul.f32 %v626_v1, %v470_v59  ;;  %v930_v9 = vmul.f32 %v626_v1, %v918_v60  ;;  %v933_v10 = vmul.f32 %v626_v1, %v920_v61 }
 0x154   :  { %v231_v11 = vrot.slane %v628_v6, 4  ;;  %v471_v12 = vmul.f32 %v628_v6, %v470_v59  ;;  %v354_v13 = vmul.f32 %v628_v6, %v918_v60  ;;  %v937_v14 = vmul.f32 %v628_v6, %v920_v61 }
 0x155   :  { %v238_v15 = vadd.f32 %v626_v1, %v237_v7  ;;  %v481_v16 = vrot.slane %v472_v8, 4  ;;  %v364_v17 = vrot.slane %v930_v9, 4  ;;  %v424_v18 = vrot.slane %v933_v10, 4 }
 0x156   :  { %v941_v19 = vpop.eup %629  ;;  %v232_v20 = vadd.f32 %v628_v6, %v231_v11  ;;  %v475_v21 = vrot.slane %v471_v12, 4  ;;  %v358_v22 = vrot.slane %v354_v13, 4  ;;  %v418_v23 = vrot.slane %v937_v14, 4 }
 0x157   :  { %v632_v24 = vpop.eup %631  ;;  %v239_v25 = vrot.slane %v238_v15, 2  ;;  %v249_v26 = vrot.slane %v941_v19, 4  ;;  %v474_v27 = vmul.f32 %v941_v19, %v470_v59  ;;  %v482_v28 = vadd.f32 %v481_v16, %v472_v8 }
 0x158   :  { %v233_v29 = vrot.slane %v232_v20, 2  ;;  %v243_v30 = vrot.slane %v632_v24, 4  ;;  %v473_v31 = vmul.f32 %v632_v24, %v470_v59  ;;  %v476_v32 = vadd.f32 %v475_v21, %v471_v12 }
 0x159   :  { %v240_v33 = vadd.f32 %v239_v25, %v238_v15  ;;  %v250_v34 = vadd.f32 %v941_v19, %v249_v26  ;;  %v483_v36 = vrot.slane %v482_v28, 2  ;;  %v493_v37 = vrot.slane %v474_v27, 4 }
 0x15a   :  { %v234_v39 = vadd.f32 %v233_v29, %v232_v20  ;;  %v244_v40 = vadd.f32 %v632_v24, %v243_v30  ;;  %v477_v41 = vrot.slane %v476_v32, 2  ;;  %v487_v42 = vrot.slane %v473_v31, 4 }
 0x15b   :  { %v241_v43 = vrot.slane %v240_v33, 1  ;;  %v251_v44 = vrot.slane %v250_v34, 2  ;;  %v484_v45 = vadd.f32 %v483_v36, %v482_v28  ;;  %v494_v46 = vadd.f32 %v493_v37, %v474_v27 }
 0x15c   :  { %v235_v47 = vrot.slane %v234_v39, 1  ;;  %v245_v48 = vrot.slane %v244_v40, 2  ;;  %v478_v49 = vadd.f32 %v477_v41, %v476_v32  ;;  %v488_v50 = vadd.f32 %v487_v42, %v473_v31 }
 0x15d   :  { %v242_v51 = vadd.f32 %v241_v43, %v240_v33  ;;  %v252_v52 = vadd.f32 %v251_v44, %v250_v34  ;;  %v485_v53 = vrot.slane %v484_v45, 1  ;;  %v495_v54 = vrot.slane %v494_v46, 2 }
 0x15e   :  { %v236_v55 = vadd.f32 %v235_v47, %v234_v39  ;;  %v246_v56 = vadd.f32 %v245_v48, %v244_v40  ;;  %v479_v57 = vrot.slane %v478_v49, 1  ;;  %v489_v58 = vrot.slane %v488_v50, 2 }
 0x15f   :  { %v253_v59 = vrot.slane %v252_v52, 1  ;;  %633 = vrcp.f32 %v242_v51  ;;  %v486_v1 = vadd.f32 %v485_v53, %v484_v45  ;;  %v496_v6 = vadd.f32 %v495_v54, %v494_v46 }
 0x160   :  { %v247_v7 = vrot.slane %v246_v56, 1  ;;  %635 = vrcp.f32 %v236_v55  ;;  %v480_v8 = vadd.f32 %v479_v57, %v478_v49  ;;  %v490_v11 = vadd.f32 %v489_v58, %v488_v50 }
 0x161   :  { %v254_v12 = vadd.f32 %v253_v59, %v252_v52  ;;  %v497_v15 = vrot.slane %v496_v6, 1  ;;  %v359_v16 = vadd.f32 %v358_v22, %v354_v13  ;;  %v356_v20 = vmul.f32 %v632_v24, %v918_v60 }
 0x162   :  { %v248_v21 = vadd.f32 %v247_v7, %v246_v56  ;;  %v491_v25 = vrot.slane %v490_v11, 1  ;;  %v357_v26 = vmul.f32 %v941_v19, %v918_v60  ;;  %v365_v27 = vadd.f32 %v364_v17, %v930_v9 }
 0x163   :  { %637 = vrcp.f32 %v254_v12  ;;  %v498_v28 = vadd.f32 %v497_v15, %v496_v6  ;;  %v360_v29 = vrot.slane %v359_v16, 2  ;;  %v370_v30 = vrot.slane %v356_v20, 4 }
 0x164   :  { %639 = vrcp.f32 %v248_v21  ;;  %v492_v31 = vadd.f32 %v491_v25, %v490_v11  ;;  %v366_v32 = vrot.slane %v365_v27, 2  ;;  %v376_v33 = vrot.slane %v357_v26, 4 }
 0x165   :  { %v361_v34 = vadd.f32 %v360_v29, %v359_v16  ;;  %v371_v13 = vadd.f32 %v370_v30, %v356_v20  ;;  %v416_v22 = vmul.f32 %v632_v24, %v920_v61  ;;  %v417_v36 = vmul.f32 %v941_v19, %v920_v61 }
 0x166   :  { %v367_v37 = vadd.f32 %v366_v32, %v365_v27  ;;  %v377_v60 = vadd.f32 %v376_v33, %v357_v26  ;;  %v419_v9 = vadd.f32 %v418_v23, %v937_v14  ;;  %v425_v17 = vadd.f32 %v424_v18, %v933_v10 }
 0x167   :  { %v362_v39 = vrot.slane %v361_v34, 1  ;;  %v372_v40 = vrot.slane %v371_v13, 2  ;;  %v430_v41 = vrot.slane %v416_v22, 4  ;;  %v436_v42 = vrot.slane %v417_v36, 4 }
 0x168   :  { %v368_v43 = vrot.slane %v367_v37, 1  ;;  %v378_v44 = vrot.slane %v377_v60, 2  ;;  %v420_v24 = vrot.slane %v419_v9, 2  ;;  %v426_v45 = vrot.slane %v425_v17, 2 }
 0x169   :  { %v634_v46 = vpop.eup %633  ;;  %v363_v61 = vadd.f32 %v362_v39, %v361_v34  ;;  %v373_v19 = vadd.f32 %v372_v40, %v371_v13  ;;  %v431_v47 = vadd.f32 %v430_v41, %v416_v22  ;;  %v437_v48 = vadd.f32 %v436_v42, %v417_v36 }
 0x16a   :  { %v636_v49 = vpop.eup %635  ;;  %v500_v50 = vmul.f32 %v634_v46, %v486_v1  ;;  %v369_v14 = vadd.f32 %v368_v43, %v367_v37  ;;  %v379_v23 = vadd.f32 %v378_v44, %v377_v60  ;;  %v421_v51 = vadd.f32 %v420_v24, %v419_v9 }
 0x16b   :  { %v499_v10 = vmul.f32 %v636_v49, %v480_v8  ;;  %v382_v18 = vmul.f32 %v636_v49, %v363_v61  ;;  %v374_v52 = vrot.slane %v373_v19, 1  ;;  %v427_v53 = vadd.f32 %v426_v45, %v425_v17 }
 0x16c   :  { %v512_v54 = vadd.f32 %v504_v62, %v500_v50  ;;  %v380_v55 = vrot.slane %v379_v23, 1  ;;  %v383_v56 = vmul.f32 %v634_v46, %v369_v14  ;;  %v422_v57 = vrot.slane %v421_v51, 1 }
 0x16d   :  { %v638_v58 = vpop.eup %637  ;;  %v511_v59 = vadd.f32 %v914_v35, %v499_v10  ;;  %v394_v1 = vadd.f32 %v382_v18, %v916_v38  ;;  %v375_v6 = vadd.f32 %v374_v52, %v373_v19  ;;  %v428_v7 = vrot.slane %v427_v53, 1 }
 0x16e   :  { %v640_v11 = vpop.eup %639  ;;  %v502_v12 = vmul.f32 %v638_v58, %v498_v28  ;;  %v519_v8 = vrot.slane %v512_v54, 7  ;;  %v381_v15 = vadd.f32 %v380_v55, %v379_v23  ;;  %v395_v16 = vadd.f32 %v387_v2, %v383_v56 }
 0x16f   :  { %v501_v20 = vmul.f32 %v640_v11, %v492_v31  ;;  %v447_v62 = vrot.slane %v916_v38, 5  ;;  %v384_v21 = vmul.f32 %v640_v11, %v375_v6  ;;  %v423_v25 = vadd.f32 %v422_v57, %v421_v51 }
 0x170   :  { %v514_v26 = vadd.f32 %v506_v0, %v502_v12  ;;  %v520_v27 = vsel %vm403_vm2, %v519_v8, %v511_v59  ;;  %v385_v29 = vmul.f32 %v638_v58, %v381_v15  ;;  %v402_v30 = vrot.slane %v395_v16, 7 }
 0x171   :  { %v513_v28 = vadd.f32 %v505_v63, %v501_v20  ;;  %v396_v32 = vadd.f32 %v388_v3, %v384_v21  ;;  %v432_v33 = vrot.slane %v431_v47, 2  ;;  %v438_v2 = vrot.slane %v437_v48, 2 }
 0x172   :  { %v397_v31 = vadd.f32 %v389_v5, %v385_v29  ;;  %v404_v34 = vsel %vm403_vm2, %v402_v30, %v394_v1  ;;  %v429_v13 = vadd.f32 %v428_v7, %v427_v53  ;;  %v442_v22 = vmul.f32 %v636_v49, %v423_v25 }
 0x173   :  { %v521_v0 = vrot.slane %v513_v28, 6  ;;  %v405_v36 = vrot.slane %v396_v32, 6  ;;  %v433_v37 = vadd.f32 %v432_v33, %v431_v47  ;;  %v439_v60 = vadd.f32 %v438_v2, %v437_v48 }
 0x174   :  { %v523_v9 = vrot.slane %v514_v26, 5  ;;  %v408_v17 = vrot.slane %v397_v31, 5  ;;  %v443_v35 = vmul.f32 %v634_v46, %v429_v13  ;;  %v454_v63 = vadd.f32 %v446_v4, %v442_v22 }
 0x175   :  { %v407_v3 = vsel %vm406_vm3, %v405_v36, %v404_v34  ;;  %v434_v39 = vrot.slane %v433_v37, 1  ;;  %v440_v40 = vrot.slane %v439_v60, 1  ;;  %v522_v5 = vsel %vm406_vm3, %v521_v0, %v520_v27 }
 0x176   :  { %v410_v41 = vsel %vm409_vm4, %v408_v17, %v407_v3  ;;  %v455_v42 = vadd.f32 %v447_v62, %v443_v35  ;;  %v524_v43 = vsel %vm409_vm4, %v523_v9, %v522_v5  ;;  %v449_v45 = vrot.slane %v916_v38, 7 }
 0x177   :  { %412 = vst [vmem:[#allocation11] sm:$0xf] %v410_v41  ;;  %v435_v44 = vadd.f32 %v434_v39, %v433_v37  ;;  %v441_v24 = vadd.f32 %v440_v40, %v439_v60  ;;  %526 = vst [vmem:[#allocation11 + $0x8] sm:$0xf] %v524_v43  ;;  %v448_v4 = vrot.slane %v916_v38, 6 }
 0x178   :  { %v462_v46 = vrot.slane %v455_v42, 7 }
 0x179   :  { %v444_v61 = vmul.f32 %v640_v11, %v435_v44  ;;  %v445_v19 = vmul.f32 %v638_v58, %v441_v24 }
 0x17a   :  { %v463_v47 = vsel %vm403_vm2, %v462_v46, %v454_v63 }
 0x17b   :  { %v456_v48 = vadd.f32 %v448_v4, %v444_v61  ;;  %v457_v49 = vadd.f32 %v449_v45, %v445_v19 }
 0x17d   :  { %v464_v50 = vrot.slane %v456_v48, 6  ;;  %v466_v14 = vrot.slane %v457_v49, 5 }
 0x17f   :  { %v465_v23 = vsel %vm406_vm3, %v464_v50, %v463_v47 }
 0x180   :  { %v467_v51 = vsel %vm409_vm4, %v466_v14, %v465_v23 }
 0x181   :  { %469 = vst [vmem:[#allocation11 + $0x4] sm:$0xf] %v467_v51 }
 0x182   :  { %762 = shalt.err (!%p759_p2)
}
 0x183   :  { %s763_s7 = scalar_lea.hbm %s1008_s5, 256 }
 0x184   :  { %p764_p3 = scmp.ne.s32.totalorder %s1008_s5, %s763_s7  ;;  %p767_p4 = scmp.lt.u32.totalorder %s763_s7, %s1008_s5 }
 0x186   :  { %p769_p5 = pnand %p767_p4, %p764_p3 }
 0x188   :  { %772 = shalt.err (!%p769_p5)
}
 0x189   :  { %538 = dma.vmem_to_hbm [thread:$0]  %s533_s28, 256, %s1008_s5, [#allocation4], %s783_s30, %s783_s30, %s784_s6  }
 0x18a   :  { %779 = dma.done.wait [#allocation4], 256  }
 0x18b   :  { %780 = vsyncadd [#allocation4], 4294967040 }
 0x18c   :  { %542 = vsyncpa [#allocation3], 1 }
 0x18d   :  { %543 = vsyncpa [#allocation6], 1 }
 0x18e   :  { %544 = vsyncpa [#allocation9], 1 }
 0x18f   :  { %545 = vsyncpa [#allocation4], 1 }

</bundles_post_ra>
